<compile_context>
chip_gen: v7x
topology: tpu7x:2x2x1
jax: 0.10.0
libtpu: 0.0.40
codegen_flags: <defaults>
</compile_context>

<pallas_src>
import jax
import jax.numpy as jnp
from jax.experimental import pallas as pl
from jax.experimental.pallas import tpu as pltpu

HIDDEN = 128
HEAD_PAD = 128         # lane-dense padded output width (>= action_dim)
DEFAULT_TILE_B = 512   # sweep 256/512/1024; VMEM footprint is tiny either way


def _round_up(n, m):
    return ((n + m - 1) // m) * m


def _choose_tile_b(B, tile_b):
    """>=16 rows (bf16 sublane packing); prefer >=2 grid steps so the
    'parallel' batch axis can shard across both TensorCores on v7x."""
    if B <= 16:
        return 16
    two_step = _round_up(pl.cdiv(B, 2), 16)   # tile giving at least 2 steps
    return max(16, min(tile_b, two_step))


def _policy_kernel(x_ref, w1_ref, b1_ref, w2_ref, b2_ref, wm_ref, bm_ref, out_ref):
    # Cast x to bf16 in-kernel (cheap VPU op overlapped with DMA) instead of a
    # standalone HBM astype pass in the wrapper.
    x = x_ref[...].astype(jnp.bfloat16)
    # fc1: bf16 operands on the MXU, f32 accumulate, f32 bias + ReLU epilogue.
    h1 = jnp.dot(x, w1_ref[...], preferred_element_type=jnp.float32)
    h1 = jnp.maximum(h1 + b1_ref[...], 0.0).astype(jnp.bfloat16)
    # fc2
    h2 = jnp.dot(h1, w2_ref[...], preferred_element_type=jnp.float32)
    h2 = jnp.maximum(h2 + b2_ref[...], 0.0).astype(jnp.bfloat16)
    # mean head (no activation) -> lane-dense 128-wide padded bf16 writeback
    out = jnp.dot(h2, wm_ref[...], preferred_element_type=jnp.float32) + bm_ref[...]
    out_ref[...] = out.astype(out_ref.dtype)


def policy_forward(x, params, *, tile_b=DEFAULT_TILE_B):
    """x: (B, state_dim) float32. Returns (B, action_dim) float32."""
    B, state_dim = x.shape
    action_dim = int(params["action_dim"])
    w1, b1 = params["w1"], params["b1"]
    w2, b2 = params["w2"], params["b2"]
    wm, bm = params["wm_pad"], params["bm_pad"]
    hidden = w1.shape[1]
    out_w = wm.shape[1]  # 128 (lane-dense padded head)

    tb = _choose_tile_b(B, tile_b)
    grid = (pl.cdiv(B, tb),)   # partial last block handled by Pallas masking

    flops = 2 * B * (state_dim * hidden + hidden * hidden + hidden * out_w)
    bytes_accessed = (
        B * state_dim * 4                                              # x (f32 in)
        + (state_dim * hidden + hidden * hidden + hidden * out_w) * 2  # weights (bf16)
        + (2 * hidden + out_w) * 4                                     # biases (f32)
        + B * out_w * 2                                                # output (bf16)
    )

    grid_spec = pltpu.PrefetchScalarGridSpec(
        num_scalar_prefetch=0,
        grid=grid,
        in_specs=[
            pl.BlockSpec((tb, state_dim), lambda i: (i, 0)),       # x tile (pipelined)
            pl.BlockSpec((state_dim, hidden), lambda i: (0, 0)),   # w1 (resident)
            pl.BlockSpec((1, hidden), lambda i: (0, 0)),           # b1
            pl.BlockSpec((hidden, hidden), lambda i: (0, 0)),      # w2
            pl.BlockSpec((1, hidden), lambda i: (0, 0)),           # b2
            pl.BlockSpec((hidden, out_w), lambda i: (0, 0)),       # wm (padded head)
            pl.BlockSpec((1, out_w), lambda i: (0, 0)),            # bm (padded head)
        ],
        out_specs=pl.BlockSpec((tb, out_w), lambda i: (i, 0)),
    )

    out_padded = pl.pallas_call(
        _policy_kernel,
        out_shape=jax.ShapeDtypeStruct((B, out_w), jnp.bfloat16),
        grid_spec=grid_spec,
        compiler_params=pltpu.CompilerParams(
            dimension_semantics=("parallel",),        # megacore on v7x
            vmem_limit_bytes=32 * 1024 * 1024,        # explicit; tiny footprint anyway
        ),
        cost_estimate=pl.CostEstimate(
            flops=flops, transcendentals=0, bytes_accessed=bytes_accessed
        ),
    )(x, w1, b1, w2, b2, wm, bm)

    # Single op: drop the zero head-padding columns and upcast to f32.
    # Fuses into the consumer when this function is inlined in a larger jit.
    return out_padded[:, :action_dim].astype(jnp.float32)


def init_params(key, state_dim, action_dim, hidden=HIDDEN, head_pad=HEAD_PAD):
    """PyTorch nn.Linear-style init (uniform +/- 1/sqrt(fan_in)).
    Weights stored transposed (in, out) and in bf16 for the MXU fast path;
    biases kept f32 (1, out). Mean head zero-padded to `head_pad` columns."""
    def linear(k, fan_in, fan_out):
        kw, kb = jax.random.split(k)
        bound = 1.0 / jnp.sqrt(fan_in)
        w = jax.random.uniform(kw, (fan_in, fan_out), jnp.float32, -bound, bound)
        b = jax.random.uniform(kb, (1, fan_out), jnp.float32, -bound, bound)
        return w, b

    k1, k2, k3 = jax.random.split(key, 3)
    w1, b1 = linear(k1, state_dim, hidden)
    w2, b2 = linear(k2, hidden, hidden)
    wm, bm = linear(k3, hidden, action_dim)
    wm_pad = jnp.zeros((hidden, head_pad), jnp.float32).at[:, :action_dim].set(wm)
    bm_pad = jnp.zeros((1, head_pad), jnp.float32).at[:, :action_dim].set(bm)
    # log_std exists as a parameter in the module but is unused by forward();
    # kept here for parity with the module's __init__.
    log_std = jnp.zeros((action_dim,), jnp.float32)
    return {
        "w1": w1.astype(jnp.bfloat16), "b1": b1,
        "w2": w2.astype(jnp.bfloat16), "b2": b2,
        "wm_pad": wm_pad.astype(jnp.bfloat16), "bm_pad": bm_pad,
        "action_dim": action_dim,
        "log_std": log_std,
    }


def _reference(x, params):
    """Plain-JAX forward matching the kernel's bf16 rounding points
    (bf16 matmul operands, f32 accumulate, f32 bias/ReLU, bf16 output)."""
    action_dim = int(params["action_dim"])
    xb = x.astype(jnp.bfloat16).astype(jnp.float32)
    w1f = params["w1"].astype(jnp.float32)
    w2f = params["w2"].astype(jnp.float32)
    wmf = params["wm_pad"].astype(jnp.float32)
    h1 = jnp.maximum(xb @ w1f + params["b1"], 0.0)
    h1 = h1.astype(jnp.bfloat16).astype(jnp.float32)
    h2 = jnp.maximum(h1 @ w2f + params["b2"], 0.0)
    h2 = h2.astype(jnp.bfloat16).astype(jnp.float32)
    out = (h2 @ wmf + params["bm_pad"]).astype(jnp.bfloat16).astype(jnp.float32)
    return out[:, :action_dim]


if __name__ == "__main__":
    state_dim, action_dim = 32, 8

    key = jax.random.PRNGKey(0)
    kx, kp, kx2 = jax.random.split(key, 3)
    params = init_params(kp, state_dim, action_dim)

    # Small case (single grid step).
    batch = 2
    x = jax.random.normal(kx, (batch, state_dim), jnp.float32)
    mean = policy_forward(x, params)
    jax.block_until_ready(mean)
    assert mean.shape == (batch, action_dim)
    ref = _reference(x, params)
    assert jnp.allclose(mean, ref, atol=2e-2, rtol=2e-2), (
        float(jnp.max(jnp.abs(mean - ref))))

    # Multi-step case exercising the partial last block (no jnp.pad path) and
    # the >=2-step megacore-friendly grid.
    batch2 = 200
    x2 = jax.random.normal(kx2, (batch2, state_dim), jnp.float32)
    mean2 = policy_forward(x2, params)
    jax.block_until_ready(mean2)
    assert mean2.shape == (batch2, action_dim)
    ref2 = _reference(x2, params)
    assert jnp.allclose(mean2, ref2, atol=2e-2, rtol=2e-2), (
        float(jnp.max(jnp.abs(mean2 - ref2))))

    print("KERNEL_OK")
</pallas_src>

<mosaic_0001>
module attributes {stable_mosaic.version = 11 : i64} {
  func.func @_policy_kernel(%arg0: i32, %arg1: memref<16x32xf32, #tpu.memory_space<vmem>>, %arg2: memref<32x128xbf16, #tpu.memory_space<vmem>>, %arg3: memref<1x128xf32, #tpu.memory_space<vmem>>, %arg4: memref<128x128xbf16, #tpu.memory_space<vmem>>, %arg5: memref<1x128xf32, #tpu.memory_space<vmem>>, %arg6: memref<128x128xbf16, #tpu.memory_space<vmem>>, %arg7: memref<1x128xf32, #tpu.memory_space<vmem>>, %arg8: memref<16x128xbf16, #tpu.memory_space<vmem>>) attributes {dimension_semantics = [#tpu.dimension_semantics<parallel>], iteration_bounds = array<i64: 1>, scalar_prefetch = 0 : i64, scratch_operands = 0 : i64, tpu.core_type = #tpu.core_type<tc>, window_params = [{transform_indices = @transform_0, window_bounds = array<i64: 16, 32>}, {pipeline_mode = #tpu.pipeline_mode<synchronous>, transform_indices = @transform_1, window_bounds = array<i64: 32, 128>}, {pipeline_mode = #tpu.pipeline_mode<synchronous>, transform_indices = @transform_2, window_bounds = array<i64: 1, 128>}, {pipeline_mode = #tpu.pipeline_mode<synchronous>, transform_indices = @transform_3, window_bounds = array<i64: 128, 128>}, {pipeline_mode = #tpu.pipeline_mode<synchronous>, transform_indices = @transform_4, window_bounds = array<i64: 1, 128>}, {pipeline_mode = #tpu.pipeline_mode<synchronous>, transform_indices = @transform_5, window_bounds = array<i64: 128, 128>}, {pipeline_mode = #tpu.pipeline_mode<synchronous>, transform_indices = @transform_6, window_bounds = array<i64: 1, 128>}, {transform_indices = @transform_7, window_bounds = array<i64: 16, 128>}]} {
    %c0 = arith.constant 0 : index
    %c0_0 = arith.constant 0 : index
    %0 = vector.load %arg1[%c0, %c0_0] : memref<16x32xf32, #tpu.memory_space<vmem>>, vector<16x32xf32>
    %1 = arith.truncf %0 : vector<16x32xf32> to vector<16x32xbf16>
    %c0_1 = arith.constant 0 : index
    %c0_2 = arith.constant 0 : index
    %2 = vector.load %arg2[%c0_1, %c0_2] : memref<32x128xbf16, #tpu.memory_space<vmem>>, vector<32x128xbf16>
    %cst = arith.constant dense<0.000000e+00> : vector<16x128xf32>
    %3 = tpu.matmul %1, %2, %cst {dimension_numbers = #tpu.dot_dimension_numbers<[1], [0], [0], [1], [0, 0, 1, 1], [], []>} : vector<16x32xbf16>, vector<32x128xbf16>, vector<16x128xf32> -> vector<16x128xf32>
    %c0_3 = arith.constant 0 : index
    %c0_4 = arith.constant 0 : index
    %4 = vector.load %arg3[%c0_3, %c0_4] : memref<1x128xf32, #tpu.memory_space<vmem>>, vector<1x128xf32>
    %5 = vector.broadcast %4 : vector<1x128xf32> to vector<16x128xf32>
    %6 = arith.addf %3, %5 : vector<16x128xf32>
    %cst_5 = arith.constant 0.000000e+00 : f32
    %7 = vector.broadcast %cst_5 : f32 to vector<16x128xf32>
    %8 = arith.maximumf %6, %7 : vector<16x128xf32>
    %9 = arith.truncf %8 : vector<16x128xf32> to vector<16x128xbf16>
    %c0_6 = arith.constant 0 : index
    %c0_7 = arith.constant 0 : index
    %10 = vector.load %arg4[%c0_6, %c0_7] : memref<128x128xbf16, #tpu.memory_space<vmem>>, vector<128x128xbf16>
    %cst_8 = arith.constant dense<0.000000e+00> : vector<16x128xf32>
    %11 = tpu.matmul %9, %10, %cst_8 {dimension_numbers = #tpu.dot_dimension_numbers<[1], [0], [0], [1], [0, 0, 1, 1], [], []>} : vector<16x128xbf16>, vector<128x128xbf16>, vector<16x128xf32> -> vector<16x128xf32>
    %c0_9 = arith.constant 0 : index
    %c0_10 = arith.constant 0 : index
    %12 = vector.load %arg5[%c0_9, %c0_10] : memref<1x128xf32, #tpu.memory_space<vmem>>, vector<1x128xf32>
    %13 = vector.broadcast %12 : vector<1x128xf32> to vector<16x128xf32>
    %14 = arith.addf %11, %13 : vector<16x128xf32>
    %cst_11 = arith.constant 0.000000e+00 : f32
    %15 = vector.broadcast %cst_11 : f32 to vector<16x128xf32>
    %16 = arith.maximumf %14, %15 : vector<16x128xf32>
    %17 = arith.truncf %16 : vector<16x128xf32> to vector<16x128xbf16>
    %c0_12 = arith.constant 0 : index
    %c0_13 = arith.constant 0 : index
    %18 = vector.load %arg6[%c0_12, %c0_13] : memref<128x128xbf16, #tpu.memory_space<vmem>>, vector<128x128xbf16>
    %cst_14 = arith.constant dense<0.000000e+00> : vector<16x128xf32>
    %19 = tpu.matmul %17, %18, %cst_14 {dimension_numbers = #tpu.dot_dimension_numbers<[1], [0], [0], [1], [0, 0, 1, 1], [], []>} : vector<16x128xbf16>, vector<128x128xbf16>, vector<16x128xf32> -> vector<16x128xf32>
    %c0_15 = arith.constant 0 : index
    %c0_16 = arith.constant 0 : index
    %20 = vector.load %arg7[%c0_15, %c0_16] : memref<1x128xf32, #tpu.memory_space<vmem>>, vector<1x128xf32>
    %21 = vector.broadcast %20 : vector<1x128xf32> to vector<16x128xf32>
    %22 = arith.addf %19, %21 : vector<16x128xf32>
    %23 = arith.truncf %22 : vector<16x128xf32> to vector<16x128xbf16>
    %c0_17 = arith.constant 0 : index
    %c0_18 = arith.constant 0 : index
    %24 = vector.load %arg8[%c0_17, %c0_18] : memref<16x128xbf16, #tpu.memory_space<vmem>>, vector<16x128xbf16>
    tpu.vector_store %arg8[%c0_17, %c0_18], %23 {strides = array<i32>} : memref<16x128xbf16, #tpu.memory_space<vmem>>, vector<16x128xbf16>,
    return
  }
  func.func @transform_0(%arg0: i32) -> (i32, i32) {
    %c0_i32 = arith.constant 0 : i32
    %c0_i32_0 = arith.constant 0 : i32
    return %arg0, %c0_i32 : i32, i32
  }
  func.func @transform_1(%arg0: i32) -> (i32, i32) {
    %c0_i32 = arith.constant 0 : i32
    %c0_i32_0 = arith.constant 0 : i32
    %c0_i32_1 = arith.constant 0 : i32
    return %c0_i32, %c0_i32_0 : i32, i32
  }
  func.func @transform_2(%arg0: i32) -> (i32, i32) {
    %c0_i32 = arith.constant 0 : i32
    %c0_i32_0 = arith.constant 0 : i32
    %c0_i32_1 = arith.constant 0 : i32
    return %c0_i32, %c0_i32_0 : i32, i32
  }
  func.func @transform_3(%arg0: i32) -> (i32, i32) {
    %c0_i32 = arith.constant 0 : i32
    %c0_i32_0 = arith.constant 0 : i32
    %c0_i32_1 = arith.constant 0 : i32
    return %c0_i32, %c0_i32_0 : i32, i32
  }
  func.func @transform_4(%arg0: i32) -> (i32, i32) {
    %c0_i32 = arith.constant 0 : i32
    %c0_i32_0 = arith.constant 0 : i32
    %c0_i32_1 = arith.constant 0 : i32
    return %c0_i32, %c0_i32_0 : i32, i32
  }
  func.func @transform_5(%arg0: i32) -> (i32, i32) {
    %c0_i32 = arith.constant 0 : i32
    %c0_i32_0 = arith.constant 0 : i32
    %c0_i32_1 = arith.constant 0 : i32
    return %c0_i32, %c0_i32_0 : i32, i32
  }
  func.func @transform_6(%arg0: i32) -> (i32, i32) {
    %c0_i32 = arith.constant 0 : i32
    %c0_i32_0 = arith.constant 0 : i32
    %c0_i32_1 = arith.constant 0 : i32
    return %c0_i32, %c0_i32_0 : i32, i32
  }
  func.func @transform_7(%arg0: i32) -> (i32, i32) {
    %c0_i32 = arith.constant 0 : i32
    %c0_i32_0 = arith.constant 0 : i32
    return %arg0, %c0_i32 : i32, i32
  }
}

</mosaic_0001>

<bundles_post_ra>
// kernel: tpu_custom_call.1
= control target key start
LH: loop header
LB: loop body
LE: loop exit
PB: predicated region body
PF: predicated region fallthrough
CT: control target
= control target key end

     0   :  { %12 = vsyncpa [#allocation3], 0  ;;  %s879_s0 = inlined_call_operand.hbm [shape: f32[2,32], index: 0, kind: input, shape index: {}]   ;;  %s880_s1 = inlined_call_operand.hbm [shape: bf16[32,128], index: 1, kind: input, shape index: {}]   ;;  %s881_s2 = inlined_call_operand.vmem [shape: f32[1,128], index: 2, kind: input, shape index: {}]   ;;  %s882_s3 = inlined_call_operand.hbm [shape: bf16[128,128], index: 3, kind: input, shape index: {}]   ;;  %s883_s4 = inlined_call_operand.vmem [shape: f32[1,128], index: 4, kind: input, shape index: {}]   ;;  %s884_s5 = inlined_call_operand.hbm [shape: bf16[128,128], index: 5, kind: input, shape index: {}]   ;;  %s885_s6 = inlined_call_operand.vmem [shape: f32[1,128], index: 6, kind: input, shape index: {}]   ;;  %s886_s7 = inlined_call_operand.hbm [shape: bf16[2,128], index: 7, kind: output, shape index: {}]  }
   0x1   :  { %13 = vsyncpa [#allocation6], 0 }
   0x2   :  { %14 = vsyncpa [#allocation9], 0 }
   0x3   :  { %15 = vsyncpa [#allocation4], 0 }
   0x4   :  { %20 = vsyncadd [#allocation3], 224  ;;  %s716_s24 = smov [#allocation5]   ;;  %s598_s28 = scalar_lea.hbm %s880_s1, 256 }
   0x5   :  { %s33_s25 = sshll.u32 %s716_s24, 4  ;;  %p599_p0 = scmp.ne.s32.totalorder %s880_s1, %s598_s28  ;;  %s34_s25 = int_to_ptr.vmem [resolvable:$true] %s33_s25 }
   0x6   :  { %p602_p1 = scmp.lt.u32.totalorder %s598_s28, %s880_s1 }
   0x8   :  { %p604_p2 = pnand %p602_p1, %p599_p0 }
   0xa   :  { %607 = shalt.err (!%p604_p2)
}
   0xb   :  { %s608_s10 = scalar_lea.vmem %s34_s25, 256  ;;  %p613_p4 = scmp.lt.s32.totalorder %s34_s25, %s34_s25 }
   0xc   :  { %p609_p3 = scmp.ne.s32.totalorder %s34_s25, %s608_s10  ;;  %p614_p5 = scmp.lt.s32.totalorder %s608_s10, %s608_s10 }
   0xe   :  { %p615_p6 = por %p614_p5, %p613_p4 }
  0x10   :  { %p616_p7 = pnand %p615_p6, %p609_p3 }
  0x12   :  { %619 = shalt.err (!%p616_p7)
}
  0x13   :  { %s717_s11 = smov 64   ;;  %s718_s12 = smov 4  }
  0x14   :  { %39 = dma.hbm_to_vmem [thread:$0]  %s880_s1, 256, %s34_s25, [#allocation6], %s717_s11, %s717_s11, %s718_s12  }
  0x15   :  { %s719_s15 = smov [#allocation2]   ;;  %s620_s19 = scalar_lea.hbm %s879_s0, 32 }
  0x16   :  { %s21_s16 = sshll.u32 %s719_s15, 4  ;;  %p621_p8 = scmp.ne.s32.totalorder %s879_s0, %s620_s19  ;;  %s22_s16 = int_to_ptr.vmem [resolvable:$true] %s21_s16 }
  0x17   :  { %p624_p9 = scmp.lt.u32.totalorder %s620_s19, %s879_s0 }
  0x19   :  { %p626_p10 = pnand %p624_p9, %p621_p8 }
  0x1b   :  { %629 = shalt.err (!%p626_p10)
}
  0x1c   :  { %s630_s24 = scalar_lea.vmem %s22_s16, 32  ;;  %s634_s1 = scalar_lea.vmem %s22_s16, 256 }
  0x1d   :  { %p631_p11 = scmp.ne.s32.totalorder %s22_s16, %s630_s24  ;;  %p635_p12 = scmp.lt.s32.totalorder %s22_s16, %s22_s16 }
  0x1e   :  { %p636_p13 = scmp.lt.s32.totalorder %s634_s1, %s630_s24 }
  0x20   :  { %p637_p0 = por %p636_p13, %p635_p12 }
  0x22   :  { %p638_p1 = pnand %p637_p0, %p631_p11 }
  0x24   :  { %641 = shalt.err (!%p638_p1)
}
  0x25   :  { %s720_s25 = smov 32   ;;  %s721_s26 = smov 2  }
  0x26   :  { %27 = dma.hbm_to_vmem [thread:$0]  %s879_s0, 32, %s22_s16, [#allocation3], %s720_s25, %s720_s25, %s721_s26  }
  0x27   :  { %s722_s29 = smov [#allocation7]   ;;  %s723_s8 = smov [#allocation8]  }
  0x28   :  { %s47_s30 = sshll.u32 %s722_s29, 4  ;;  %s61_s9 = sshll.u32 %s723_s8, 4  ;;  %s48_s30 = int_to_ptr.vmem [resolvable:$true] %s47_s30  ;;  %s797_s9 = int_to_ptr.vmem [resolvable:$true] %s61_s9 }
  0x29   :  { %s642_s14 = scalar_lea.hbm %s882_s3, 1024 }
  0x2a   :  { %p643_p2 = scmp.ne.s32.totalorder %s882_s3, %s642_s14  ;;  %p646_p3 = scmp.lt.u32.totalorder %s642_s14, %s882_s3 }
  0x2c   :  { %p648_p4 = pnand %p646_p3, %p643_p2 }
  0x2e   :  { %651 = shalt.err (!%p648_p4)
}
  0x2f   :  { %s652_s0 = scalar_lea.vmem %s48_s30, 1024  ;;  %p657_p6 = scmp.lt.s32.totalorder %s48_s30, %s48_s30 }
  0x30   :  { %p653_p5 = scmp.ne.s32.totalorder %s48_s30, %s652_s0  ;;  %p658_p7 = scmp.lt.s32.totalorder %s652_s0, %s652_s0 }
  0x32   :  { %p659_p8 = por %p658_p7, %p657_p6 }
  0x34   :  { %p660_p9 = pnand %p659_p8, %p653_p5 }
  0x36   :  { %663 = shalt.err (!%p660_p9)
}
  0x37   :  { %53 = dma.hbm_to_vmem [thread:$0]  %s882_s3, 1024, %s48_s30, [#allocation6], %s717_s11, %s717_s11, %s718_s12  }
  0x38   :  { %s664_s23 = scalar_lea.hbm %s884_s5, 1024 }
  0x39   :  { %p665_p10 = scmp.ne.s32.totalorder %s884_s5, %s664_s23  ;;  %p668_p11 = scmp.lt.u32.totalorder %s664_s23, %s884_s5 }
  0x3b   :  { %p670_p12 = pnand %p668_p11, %p665_p10 }
  0x3d   :  { %673 = shalt.err (!%p670_p12)
}
  0x3e   :  { %s674_s27 = scalar_lea.vmem %s797_s9, 1024  ;;  %p679_p0 = scmp.lt.s32.totalorder %s797_s9, %s797_s9 }
  0x3f   :  { %p675_p13 = scmp.ne.s32.totalorder %s797_s9, %s674_s27  ;;  %p680_p1 = scmp.lt.s32.totalorder %s674_s27, %s674_s27 }
  0x41   :  { %p681_p2 = por %p680_p1, %p679_p0 }
  0x43   :  { %p682_p3 = pnand %p681_p2, %p675_p13 }
  0x45   :  { %685 = shalt.err (!%p682_p3)
}
  0x46   :  { %67 = dma.hbm_to_vmem [thread:$0]  %s884_s5, 1024, %s797_s9, [#allocation9], %s717_s11, %s717_s11, %s718_s12  }
  0x47   :  { %708 = dma.done.wait [#allocation3], 256  }
  0x48   :  { %709 = vsyncadd [#allocation3], 4294967040 }
  0x49   :  { %710 = dma.done.wait [#allocation6], 1280  }
  0x4a   :  { %711 = vsyncadd [#allocation6], 4294966016 }
  0x4b   :  { %712 = dma.done.wait [#allocation9], 1024  }
  0x4c   :  { %713 = vsyncadd [#allocation9], 4294966272  ;;  %v724_v0 = vmov 0.0   ;;  %vm725_vm0 = vmmov 0   ;;  %v580_v1 = vld [vmem:[#allocation5] sm:$0xff]   ;;  %v581_v2 = vld [vmem:[#allocation5 + $0x8] sm:$0xff]   ;;  %v390_v44 = vlaneseq }
  0x4d   :  { %518 = vmatprep.subr.bf16.mxu0 %v724_v0  ;;  %522 = vmatprep.mubr.msk.bf16.mxu0 %vm725_vm0, %v724_v0  ;;  %v83_v3 = vld [vmem:[#allocation2] sm:$0xff]  ;;  %v84_v4 = vld [vmem:[#allocation2 + $0x8] sm:$0xff]  ;;  %vm109_vm1 = vcmask 261120   ;;  %v584_v8 = vld [vmem:[#allocation7 + $0x10] sm:$0xff]   ;;  %v726_v42 = vmov 1966171168  }
  0x4e   :  { %526 = vmatprep.subr.bf16.mxu1 %v724_v0  ;;  %542 = vmatprep.mubr.msk.bf16.mxu1 %vm725_vm0, %v724_v0  ;;  %v582_v5 = vld [vmem:[#allocation7] sm:$0xff]   ;;  %v85_v6 = vpack.c.bf16 %v84_v4, %v83_v3  ;;  %v583_v7 = vld [vmem:[#allocation7 + $0x8] sm:$0xff]   ;;  %v585_v9 = vld [vmem:[#allocation7 + $0x18] sm:$0xff]   ;;  %v388_v43 = vunpack.c.l.s4 %v726_v42  ;;  %v391_v46 = vshrl.u32 %v390_v44, 7 }
  0x4f   :  { %519 = vmatpush3.bf16.msra.mxu0 %v580_v1  ;;  %527 = vmatpush3.bf16.msra.mxu1 %v582_v5  ;;  %v586_v10 = vld [vmem:[#allocation7 + $0x20] sm:$0xff]   ;;  %v587_v11 = vld [vmem:[#allocation7 + $0x28] sm:$0xff]   ;;  %v588_v12 = vld [vmem:[#allocation7 + $0x30] sm:$0xff]  }
  0x50   :  { %520 = vmatprep.subr.bf16.mxu0 %v724_v0  ;;  %528 = vmatprep.subr.bf16.mxu1 %v724_v0  ;;  %v589_v13 = vld [vmem:[#allocation7 + $0x38] sm:$0xff]   ;;  %v590_v14 = vld [vmem:[#allocation8] sm:$0xff]   ;;  %v591_v15 = vld [vmem:[#allocation8 + $0x8] sm:$0xff]   ;;  %v389_v45 = vunpack.c.0.s8 %v388_v43 }
  0x51   :  { %v592_v16 = vld [vmem:[#allocation8 + $0x10] sm:$0xff]   ;;  %v593_v17 = vld [vmem:[#allocation8 + $0x18] sm:$0xff]   ;;  %v594_v18 = vld [vmem:[#allocation8 + $0x20] sm:$0xff]  }
  0x52   :  { %v595_v19 = vld [vmem:[#allocation8 + $0x28] sm:$0xff]   ;;  %v470_v20 = vld [vmem:[%s881_s2] ss:$0 sm:$0xff]  ;;  %v596_v30 = vld [vmem:[#allocation8 + $0x30] sm:$0xff]   ;;  %v392_v53 = vsub.s32 %v389_v45, %v391_v46 }
  0x53   :  { %521 = vmatpush3.bf16.msra.mxu0 %v581_v2  ;;  %529 = vmatpush3.bf16.msra.mxu1 %v583_v7  ;;  %v597_v31 = vld [vmem:[#allocation8 + $0x38] sm:$0xff]   ;;  %v474_v32 = vld [vmem:[%s883_s4] ss:$0 sm:$0xff] }
  0x54   :  { %546 = vmatprep.subr.bf16.mxu0 %v724_v0  ;;  %530 = vmatprep.subr.bf16.mxu1 %v724_v0  ;;  %v483_v47 = vld [vmem:[%s885_s6] ss:$0 sm:$0xff] }
  0x56   :  { %523 = vmatmul.mubr.msk.bf16.vlgmr.msra.gmra.mrb[0].mxu0 %vm109_vm1, %v85_v6 }
  0x57   :  { %562 = vmatprep.mubr.msk.bf16.mxu0 %vm725_vm0, %v724_v0  ;;  %531 = vmatpush3.bf16.msra.mxu1 %v584_v8 }
  0x58   :  { %532 = vmatprep.subr.bf16.mxu1 %v724_v0  ;;  %547 = vmatpush3.bf16.msra.mxu0 %v590_v14 }
  0x59   :  { %548 = vmatprep.subr.bf16.mxu0 %v724_v0 }
  0x5b   :  { %533 = vmatpush3.bf16.msra.mxu1 %v585_v9 }
  0x5c   :  { %534 = vmatprep.subr.bf16.mxu1 %v724_v0  ;;  %549 = vmatpush3.bf16.msra.mxu0 %v591_v15 }
  0x5d   :  { %550 = vmatprep.subr.bf16.mxu0 %v724_v0 }
  0x5f   :  { %535 = vmatpush3.bf16.msra.mxu1 %v586_v10 }
  0x60   :  { %536 = vmatprep.subr.bf16.mxu1 %v724_v0  ;;  %551 = vmatpush3.bf16.msra.mxu0 %v592_v16 }
  0x61   :  { %552 = vmatprep.subr.bf16.mxu0 %v724_v0 }
  0x63   :  { %537 = vmatpush3.bf16.msra.mxu1 %v587_v11 }
  0x64   :  { %538 = vmatprep.subr.bf16.mxu1 %v724_v0  ;;  %553 = vmatpush3.bf16.msra.mxu0 %v593_v17 }
  0x65   :  { %554 = vmatprep.subr.bf16.mxu0 %v724_v0 }
  0x67   :  { %539 = vmatpush3.bf16.msra.mxu1 %v588_v12 }
  0x68   :  { %540 = vmatprep.subr.bf16.mxu1 %v724_v0  ;;  %555 = vmatpush3.bf16.msra.mxu0 %v594_v18 }
  0x69   :  { %556 = vmatprep.subr.bf16.mxu0 %v724_v0 }
  0x6b   :  { %541 = vmatpush3.bf16.msra.mxu1 %v589_v13 }
  0x6c   :  { %557 = vmatpush3.bf16.msra.mxu0 %v595_v19 }
  0x6d   :  { %558 = vmatprep.subr.bf16.mxu0 %v724_v0 }
  0x70   :  { %559 = vmatpush3.bf16.msra.mxu0 %v596_v30 }
  0x71   :  { %560 = vmatprep.subr.bf16.mxu0 %v724_v0 }
  0x74   :  { %561 = vmatpush3.bf16.msra.mxu0 %v597_v31 }
 0x129   :  { %v147_v21 = vpop.f32.mrb[0].mxu0 }
 0x12a   :  { %v148_v22 = vadd.f32 %v470_v20, %v147_v21  ;;  %v524_v23 = vpop.f32.mrb[1].mxu0 }
 0x12b   :  { %v150_v24 = vpop.f32.mrb[2].mxu0 }
 0x12c   :  { %v151_v25 = vadd.f32 %v470_v20, %v150_v24  ;;  %v525_v26 = vpop.f32.mrb[3].mxu0  ;;  %v154_v27 = vmax.f32 %v148_v22, 0.0 }
 0x12e   :  { %v155_v28 = vmax.f32 %v151_v25, 0.0 }
 0x130   :  { %v156_v29 = vpack.c.bf16 %v155_v28, %v154_v27 }
 0x132   :  { %543 = vmatmul.mubr.bf16.vlgmr.msra.gmra.mrb[0].mxu1 %v156_v29 }
 0x205   :  { %v262_v33 = vpop.f32.mrb[0].mxu1 }
 0x206   :  { %v263_v34 = vadd.f32 %v474_v32, %v262_v33  ;;  %v544_v35 = vpop.f32.mrb[1].mxu1 }
 0x207   :  { %v265_v36 = vpop.f32.mrb[2].mxu1 }
 0x208   :  { %v266_v37 = vadd.f32 %v474_v32, %v265_v36  ;;  %v545_v38 = vpop.f32.mrb[3].mxu1  ;;  %v269_v39 = vmax.f32 %v263_v34, 0.0 }
 0x20a   :  { %v270_v40 = vmax.f32 %v266_v37, 0.0 }
 0x20c   :  { %v271_v41 = vpack.c.bf16 %v270_v40, %v269_v39 }
 0x20e   :  { %563 = vmatmul.mubr.bf16.vlgmr.msra.gmra.mrb[4].mxu0 %v271_v41 }
 0x2e1   :  { %v377_v48 = vpop.f32.mrb[4].mxu0 }
 0x2e2   :  { %v564_v49 = vpop.f32.mrb[5].mxu0  ;;  %v378_v51 = vadd.f32 %v483_v47, %v377_v48 }
 0x2e3   :  { %v380_v50 = vpop.f32.mrb[6].mxu0 }
 0x2e4   :  { %v381_v52 = vadd.f32 %v483_v47, %v380_v50  ;;  %v565_v54 = vpop.f32.mrb[7].mxu0 }
 0x2e6   :  { %v384_v55 = vpack.c.bf16 %v381_v52, %v378_v51  ;;  %v492_v56 = vpack.c.bf16 %v381_v52, %v381_v52 }
 0x2e8   :  { %v393_v57 = vrot.slane %v384_v55, %v392_v53  ;;  %v400_v58 = vrot.slane %v492_v56, %v392_v53 }
 0x2ea   :  { %v401_v59 = vcombine.high %v393_v57, %v393_v57  ;;  %v402_v60 = vcombine.high %v400_v58, %v400_v58  ;;  %v409_v61 = vrot.slane %v393_v57, %v392_v53  ;;  %v416_v62 = vrot.slane %v400_v58, %v392_v53  ;;  %493 = vst.sshfl [vmem:[#allocation10] sm:$0x1 pattern:$0x73625140] %v393_v57 }
 0x2eb   :  { %495 = vst.sshfl [vmem:[#allocation10 + $0x4] sm:$0x1 pattern:$0x73625140] %v400_v58 }
 0x2ec   :  { %v423_v63 = vrot.slane %v401_v59, %v392_v53  ;;  %v430_v0 = vrot.slane %v402_v60, %v392_v53  ;;  %v431_v1 = vcombine.high %v409_v61, %v409_v61  ;;  %v432_v2 = vcombine.high %v416_v62, %v416_v62  ;;  %494 = vst.sshfl [vmem:[#allocation10 + $0x1] sm:$0x1 pattern:$0x73625140] %v401_v59 }
 0x2ed   :  { %496 = vst.sshfl [vmem:[#allocation10 + $0x5] sm:$0x1 pattern:$0x73625140] %v402_v60 }
 0x2ee   :  { %v433_v3 = vcombine.high %v423_v63, %v423_v63  ;;  %v434_v4 = vcombine.high %v430_v0, %v430_v0  ;;  %445 = vst [vmem:[#allocation10 + $0x2] sm:$0x1] %v431_v1  ;;  %449 = vst [vmem:[#allocation10 + $0x6] sm:$0x1] %v432_v2 }
 0x2f0   :  { %446 = vst [vmem:[#allocation10 + $0x3] sm:$0x1] %v433_v3  ;;  %450 = vst [vmem:[#allocation10 + $0x7] sm:$0x1] %v434_v4 }
 0x2f1   :  { %455 = vsyncadd [#allocation4], 112  ;;  %s727_s4 = smov [#allocation10]  }
 0x2f2   :  { %s456_s6 = sshll.u32 %s727_s4, 4  ;;  %s457_s6 = int_to_ptr.vmem [resolvable:$true] %s456_s6 }
 0x2f3   :  { %s686_s8 = scalar_lea.vmem %s457_s6, 16  ;;  %s690_s9 = scalar_lea.vmem %s457_s6, 128 }
 0x2f4   :  { %p687_p4 = scmp.ne.s32.totalorder %s457_s6, %s686_s8  ;;  %p691_p5 = scmp.lt.s32.totalorder %s457_s6, %s457_s6 }
 0x2f5   :  { %p692_p6 = scmp.lt.s32.totalorder %s690_s9, %s686_s8 }
 0x2f7   :  { %p693_p7 = por %p692_p6, %p691_p5 }
 0x2f9   :  { %p694_p8 = pnand %p693_p7, %p687_p4 }
 0x2fb   :  { %697 = shalt.err (!%p694_p8)
}
 0x2fc   :  { %s698_s14 = scalar_lea.hbm %s886_s7, 16 }
 0x2fd   :  { %p699_p9 = scmp.ne.s32.totalorder %s886_s7, %s698_s14  ;;  %p702_p10 = scmp.lt.u32.totalorder %s698_s14, %s886_s7 }
 0x2ff   :  { %p704_p11 = pnand %p702_p10, %p699_p9 }
 0x301   :  { %707 = shalt.err (!%p704_p11)
}
 0x302   :  { %s728_s0 = smov 16   ;;  %s729_s16 = smov 1  }
 0x303   :  { %462 = dma.vmem_to_hbm [thread:$0]  %s457_s6, 16, %s886_s7, [#allocation4], %s728_s0, %s728_s0, %s729_s16  }
 0x304   :  { %714 = dma.done.wait [#allocation4], 128  }
 0x305   :  { %715 = vsyncadd [#allocation4], 4294967168 }
 0x306   :  { %466 = vsyncpa [#allocation3], 1 }
 0x307   :  { %467 = vsyncpa [#allocation6], 1 }
 0x308   :  { %468 = vsyncpa [#allocation9], 1 }
 0x309   :  { %469 = vsyncpa [#allocation4], 1 }

</bundles_post_ra>
